<compile_context>
chip_gen: v6e
topology: v6e:2x2x1
jax: 0.10.0
libtpu: 0.0.40
codegen_flags: <defaults>
</compile_context>

<pallas_src>
import functools

import jax
import jax.numpy as jnp
from jax.experimental import pallas as pl
from jax.experimental.pallas import tpu as pltpu


def _shifted_conv_glu_kernel(
    x_ref, wa_ref, wg_ref, ba_ref, bg_ref, o_ref, *, T, K, C_in, C_out, Bb
):
    # x_ref:  (Bb, T+K-1, C_in)  left-zero-padded activations for Bb batches
    # wa_ref: (K*C_in, C_out)    conv weight, tap-major rows, GLU "a" half
    # wg_ref: (K*C_in, C_out)    conv weight, GLU gate half
    # ba_ref: (1, C_out) f32     bias, "a" half
    # bg_ref: (1, C_out) f32     bias, gate half
    # o_ref:  (Bb*T, C_out)
    #
    # Build the (Bb*T, K*C_in) im2col slab once from the already-loaded tiles
    # (static shifted slices + concat -> XLU slot), then do two MXU matmuls.
    rows = []
    for b in range(Bb):  # static, unrolled (Bb is small)
        xb = x_ref[b]  # (T+K-1, C_in), loaded once
        taps = [xb[k:k + T, :] for k in range(K)]  # shifted views of the loaded tile
        rows.append(jnp.concatenate(taps, axis=-1) if K > 1 else taps[0])
    slab = jnp.concatenate(rows, axis=0) if Bb > 1 else rows[0]  # (Bb*T, K*C_in)

    a = jnp.dot(slab, wa_ref[...], preferred_element_type=jnp.float32) + ba_ref[...]
    g = jnp.dot(slab, wg_ref[...], preferred_element_type=jnp.float32) + bg_ref[...]
    o_ref[...] = (a * jax.nn.sigmoid(g)).astype(o_ref.dtype)


def shifted_conv_layer(x, weight, bias, kernel_size, *, batch_block=None):
    """x: (B, T, C_in); weight: (2*C_out, C_in, K) (PyTorch Conv1d layout); bias: (2*C_out,)."""
    B, T, C_in = x.shape
    K = kernel_size
    two_cout = weight.shape[0]
    C_out = two_cout // 2

    # --- glue: reshape params, split GLU halves, causal left padding -------------------
    # (2*C_out, C_in, K) -> (K, C_in, 2*C_out) -> (K*C_in, 2*C_out), tap-major rows,
    # matching the [tap0 | tap1 | ...] lane order of the in-kernel im2col slab.
    w = jnp.transpose(weight, (2, 1, 0)).reshape(K * C_in, two_cout).astype(x.dtype)
    w_a = w[:, :C_out]
    w_g = w[:, C_out:]
    b_a = bias[:C_out].reshape(1, C_out).astype(jnp.float32)
    b_g = bias[C_out:].reshape(1, C_out).astype(jnp.float32)

    x_pad = jnp.pad(x, ((0, 0), (K - 1, 0), (0, 0)))  # causal left pad only
    Tp = T + K - 1

    Bb = B if batch_block is None else min(batch_block, B)
    assert B % Bb == 0, "batch_block must divide B"
    num_blocks = B // Bb

    kernel = functools.partial(
        _shifted_conv_glu_kernel, T=T, K=K, C_in=C_in, C_out=C_out, Bb=Bb
    )

    itemsize = jnp.dtype(x.dtype).itemsize
    cost = pl.CostEstimate(
        flops=2 * B * T * (K * C_in) * two_cout,
        transcendentals=B * T * C_out,
        bytes_accessed=(
            x_pad.size * itemsize + w.size * itemsize + two_cout * 4
            + B * T * C_out * itemsize
        ),
    )

    out_flat = pl.pallas_call(
        kernel,
        out_shape=jax.ShapeDtypeStruct((B * T, C_out), x.dtype),
        grid_spec=pltpu.PrefetchScalarGridSpec(
            num_scalar_prefetch=0,
            grid=(num_blocks,),
            in_specs=[
                pl.BlockSpec((Bb, Tp, C_in), lambda i: (i, 0, 0)),
                pl.BlockSpec((K * C_in, C_out), lambda i: (0, 0)),
                pl.BlockSpec((K * C_in, C_out), lambda i: (0, 0)),
                pl.BlockSpec((1, C_out), lambda i: (0, 0)),
                pl.BlockSpec((1, C_out), lambda i: (0, 0)),
            ],
            out_specs=pl.BlockSpec((Bb * T, C_out), lambda i: (i, 0)),
        ),
        compiler_params=pltpu.CompilerParams(
            dimension_semantics=("parallel",),
            vmem_limit_bytes=32 * 1024 * 1024,
        ),
        cost_estimate=cost,
    )(x_pad, w_a, w_g, b_a, b_g)

    return out_flat.reshape(B, T, C_out)


def apply_weight_norm(v, g):
    # PyTorch weight_norm(dim=0): per output channel, w = g * v / ||v||_{dims 1,2}
    norm = jnp.sqrt(jnp.sum(v * v, axis=(1, 2), keepdims=True))
    return g * v / norm


def _reference(x, weight, bias, K):
    # Pure-JAX reference of the PyTorch forward (eval mode).
    x_ncw = jnp.transpose(x, (0, 2, 1))
    y = jax.lax.conv_general_dilated(
        x_ncw, weight, window_strides=(1,), padding=[(K - 1, K - 1)],
        dimension_numbers=("NCH", "OIH", "NCH"),
    )
    y = y + bias[None, :, None]
    y = jnp.transpose(y, (0, 2, 1))
    if K > 1:
        y = y[:, : -(K - 1), :]
    a, g = jnp.split(y, 2, axis=-1)
    return a * jax.nn.sigmoid(g)


if __name__ == "__main__":
    # Module config: in_channels=32, out_channels=32, kernel_size=3, stride=1,
    # padding_mode='zeros', dropout=0.0 (identity in eval), use_norm=True.
    B, T = 2, 8
    C_in, C_out, K = 32, 32, 3

    key = jax.random.PRNGKey(0)
    kx, kv, kg, kb = jax.random.split(key, 4)

    x = jax.random.normal(kx, (B, T, C_in), dtype=jnp.float32)

    # Deterministic synthetic parameters (weight_norm parametrization: v, g, bias).
    v = jax.random.normal(kv, (2 * C_out, C_in, K), dtype=jnp.float32) * 0.1
    g = jax.random.normal(kg, (2 * C_out, 1, 1), dtype=jnp.float32) * 0.5 + 1.0
    bias = jax.random.normal(kb, (2 * C_out,), dtype=jnp.float32) * 0.1
    weight = apply_weight_norm(v, g)  # effective Conv1d weight

    # f32 path (strict check vs reference).
    out = shifted_conv_layer(x, weight, bias, K)
    out = jax.block_until_ready(out)
    ref = _reference(x, weight, bias, K)
    assert out.shape == (B, T, C_out)
    assert jnp.allclose(out, ref, atol=5e-4, rtol=5e-4), "Pallas kernel mismatch vs reference"

    # bf16 activation path (weights follow activation dtype -> bf16 MXU operands); loose check.
    out_bf16 = shifted_conv_layer(x.astype(jnp.bfloat16), weight, bias, K)
    out_bf16 = jax.block_until_ready(out_bf16)
    assert out_bf16.shape == (B, T, C_out)
    assert jnp.allclose(out_bf16.astype(jnp.float32), ref, atol=1e-1, rtol=1e-1), (
        "Pallas bf16 kernel mismatch vs reference"
    )

    print("KERNEL_OK")
</pallas_src>

<mosaic_0001>
module attributes {stable_mosaic.version = 11 : i64} {
  func.func @_shifted_conv_glu_kernel(%arg0: i32, %arg1: memref<2x10x32xf32, #tpu.memory_space<vmem>>, %arg2: memref<96x32xf32, #tpu.memory_space<vmem>>, %arg3: memref<96x32xf32, #tpu.memory_space<vmem>>, %arg4: memref<1x32xf32, #tpu.memory_space<vmem>>, %arg5: memref<1x32xf32, #tpu.memory_space<vmem>>, %arg6: memref<16x32xf32, #tpu.memory_space<vmem>>) attributes {dimension_semantics = [#tpu.dimension_semantics<parallel>], iteration_bounds = array<i64: 1>, scalar_prefetch = 0 : i64, scratch_operands = 0 : i64, tpu.core_type = #tpu.core_type<tc>, window_params = [{transform_indices = @transform_0, window_bounds = array<i64: 2, 10, 32>}, {pipeline_mode = #tpu.pipeline_mode<synchronous>, transform_indices = @transform_1, window_bounds = array<i64: 96, 32>}, {pipeline_mode = #tpu.pipeline_mode<synchronous>, transform_indices = @transform_2, window_bounds = array<i64: 96, 32>}, {pipeline_mode = #tpu.pipeline_mode<synchronous>, transform_indices = @transform_3, window_bounds = array<i64: 1, 32>}, {pipeline_mode = #tpu.pipeline_mode<synchronous>, transform_indices = @transform_4, window_bounds = array<i64: 1, 32>}, {transform_indices = @transform_5, window_bounds = array<i64: 16, 32>}]} {
    %c0 = arith.constant 0 : index
    %c0_0 = arith.constant 0 : index
    %c0_1 = arith.constant 0 : index
    %0 = vector.load %arg1[%c0, %c0_0, %c0_1] : memref<2x10x32xf32, #tpu.memory_space<vmem>>, vector<1x10x32xf32>
    %1 = vector.shape_cast %0 : vector<1x10x32xf32> to vector<10x32xf32>
    %2 = vector.extract_strided_slice %1 {offsets = [0, 0], sizes = [8, 32], strides = [1, 1]} : vector<10x32xf32> to vector<8x32xf32>
    %3 = vector.extract_strided_slice %1 {offsets = [1, 0], sizes = [8, 32], strides = [1, 1]} : vector<10x32xf32> to vector<8x32xf32>
    %4 = vector.extract_strided_slice %1 {offsets = [2, 0], sizes = [8, 32], strides = [1, 1]} : vector<10x32xf32> to vector<8x32xf32>
    %5 = tpu.concatenate %2, %3, %4 in 1 : vector<8x32xf32>, vector<8x32xf32>, vector<8x32xf32> -> vector<8x96xf32>
    %c1 = arith.constant 1 : index
    %c0_2 = arith.constant 0 : index
    %c0_3 = arith.constant 0 : index
    %6 = vector.load %arg1[%c1, %c0_2, %c0_3] : memref<2x10x32xf32, #tpu.memory_space<vmem>>, vector<1x10x32xf32>
    %7 = vector.shape_cast %6 : vector<1x10x32xf32> to vector<10x32xf32>
    %8 = vector.extract_strided_slice %7 {offsets = [0, 0], sizes = [8, 32], strides = [1, 1]} : vector<10x32xf32> to vector<8x32xf32>
    %9 = vector.extract_strided_slice %7 {offsets = [1, 0], sizes = [8, 32], strides = [1, 1]} : vector<10x32xf32> to vector<8x32xf32>
    %10 = vector.extract_strided_slice %7 {offsets = [2, 0], sizes = [8, 32], strides = [1, 1]} : vector<10x32xf32> to vector<8x32xf32>
    %11 = tpu.concatenate %8, %9, %10 in 1 : vector<8x32xf32>, vector<8x32xf32>, vector<8x32xf32> -> vector<8x96xf32>
    %12 = tpu.concatenate %5, %11 in 0 : vector<8x96xf32>, vector<8x96xf32> -> vector<16x96xf32>
    %c0_4 = arith.constant 0 : index
    %c0_5 = arith.constant 0 : index
    %13 = vector.load %arg2[%c0_4, %c0_5] : memref<96x32xf32, #tpu.memory_space<vmem>>, vector<96x32xf32>
    %cst = arith.constant dense<0.000000e+00> : vector<16x32xf32>
    %14 = tpu.matmul %12, %13, %cst {dimension_numbers = #tpu.dot_dimension_numbers<[1], [0], [0], [1], [0, 0, 1, 1], [], []>} : vector<16x96xf32>, vector<96x32xf32>, vector<16x32xf32> -> vector<16x32xf32>
    %c0_6 = arith.constant 0 : index
    %c0_7 = arith.constant 0 : index
    %15 = vector.load %arg4[%c0_6, %c0_7] : memref<1x32xf32, #tpu.memory_space<vmem>>, vector<1x32xf32>
    %16 = vector.broadcast %15 : vector<1x32xf32> to vector<16x32xf32>
    %17 = arith.addf %14, %16 : vector<16x32xf32>
    %c0_8 = arith.constant 0 : index
    %c0_9 = arith.constant 0 : index
    %18 = vector.load %arg3[%c0_8, %c0_9] : memref<96x32xf32, #tpu.memory_space<vmem>>, vector<96x32xf32>
    %cst_10 = arith.constant dense<0.000000e+00> : vector<16x32xf32>
    %19 = tpu.matmul %12, %18, %cst_10 {dimension_numbers = #tpu.dot_dimension_numbers<[1], [0], [0], [1], [0, 0, 1, 1], [], []>} : vector<16x96xf32>, vector<96x32xf32>, vector<16x32xf32> -> vector<16x32xf32>
    %c0_11 = arith.constant 0 : index
    %c0_12 = arith.constant 0 : index
    %20 = vector.load %arg5[%c0_11, %c0_12] : memref<1x32xf32, #tpu.memory_space<vmem>>, vector<1x32xf32>
    %21 = vector.broadcast %20 : vector<1x32xf32> to vector<16x32xf32>
    %22 = arith.addf %19, %21 : vector<16x32xf32>
    %23 = arith.negf %22 : vector<16x32xf32>
    %24 = math.exp %23 : vector<16x32xf32>
    %cst_13 = arith.constant 1.000000e+00 : f32
    %25 = vector.broadcast %cst_13 : f32 to vector<16x32xf32>
    %26 = arith.addf %25, %24 : vector<16x32xf32>
    %27 = arith.divf %25, %26 : vector<16x32xf32>
    %28 = arith.mulf %17, %27 : vector<16x32xf32>
    %c0_14 = arith.constant 0 : index
    %c0_15 = arith.constant 0 : index
    %29 = vector.load %arg6[%c0_14, %c0_15] : memref<16x32xf32, #tpu.memory_space<vmem>>, vector<16x32xf32>
    tpu.vector_store %arg6[%c0_14, %c0_15], %28 {strides = array<i32>} : memref<16x32xf32, #tpu.memory_space<vmem>>, vector<16x32xf32>,
    return
  }
  func.func @transform_0(%arg0: i32) -> (i32, i32, i32) {
    %c0_i32 = arith.constant 0 : i32
    %c0_i32_0 = arith.constant 0 : i32
    %c0_i32_1 = arith.constant 0 : i32
    return %arg0, %c0_i32, %c0_i32_0 : i32, i32, i32
  }
  func.func @transform_1(%arg0: i32) -> (i32, i32) {
    %c0_i32 = arith.constant 0 : i32
    %c0_i32_0 = arith.constant 0 : i32
    %c0_i32_1 = arith.constant 0 : i32
    return %c0_i32, %c0_i32_0 : i32, i32
  }
  func.func @transform_2(%arg0: i32) -> (i32, i32) {
    %c0_i32 = arith.constant 0 : i32
    %c0_i32_0 = arith.constant 0 : i32
    %c0_i32_1 = arith.constant 0 : i32
    return %c0_i32, %c0_i32_0 : i32, i32
  }
  func.func @transform_3(%arg0: i32) -> (i32, i32) {
    %c0_i32 = arith.constant 0 : i32
    %c0_i32_0 = arith.constant 0 : i32
    %c0_i32_1 = arith.constant 0 : i32
    return %c0_i32, %c0_i32_0 : i32, i32
  }
  func.func @transform_4(%arg0: i32) -> (i32, i32) {
    %c0_i32 = arith.constant 0 : i32
    %c0_i32_0 = arith.constant 0 : i32
    %c0_i32_1 = arith.constant 0 : i32
    return %c0_i32, %c0_i32_0 : i32, i32
  }
  func.func @transform_5(%arg0: i32) -> (i32, i32) {
    %c0_i32 = arith.constant 0 : i32
    %c0_i32_0 = arith.constant 0 : i32
    return %arg0, %c0_i32 : i32, i32
  }
}

</mosaic_0001>

<bundles_post_ra>
// kernel: tpu_custom_call.1
= control target key start
LH: loop header
LB: loop body
LE: loop exit
PB: predicated region body
PF: predicated region fallthrough
CT: control target
= control target key end

     0   :  { %vm25_vm0 = vcmask 1046528   ;;  %vm32_vm1 = vcmask 1045504   ;;  %s416_s6 = smov 32   ;;  %s417_s13 = smov 64   ;;  %s562_s0 = inlined_call_operand.vmem [shape: f32[2,10,32], index: 0, kind: input, shape index: {}]   ;;  %s563_s1 = inlined_call_operand.vmem [shape: f32[96,32], index: 1, kind: input, shape index: {}]   ;;  %s564_s2 = inlined_call_operand.vmem [shape: f32[96,32], index: 2, kind: input, shape index: {}]   ;;  %s565_s3 = inlined_call_operand.vmem [shape: f32[1,32], index: 3, kind: input, shape index: {}]   ;;  %s566_s4 = inlined_call_operand.vmem [shape: f32[1,32], index: 4, kind: input, shape index: {}]   ;;  %s567_s5 = inlined_call_operand.hbm [shape: f32[16,32], index: 5, kind: output, shape index: {}]  }
   0x1   :  { %v454_v0 = vld [vmem:[%s562_s0 + $0x10] sm:$0xff]  ;;  %v290_v1 = vld [vmem:[%s562_s0 + $0x18] sm:$0x3]  ;;  %v462_v2 = vld [vmem:[%s562_s0] sm:$0xff] }
   0x2   :  { %v48_v3 = vrot.slane %v454_v0, 1  ;;  %v49_v4 = vrot.slane %v290_v1, 1  ;;  %v22_v5 = vld [vmem:[%s562_s0 + $0x8] sm:$0x3]  ;;  %v26_v6 = vrot.slane %v462_v2, 1  ;;  %v54_v8 = vrot.slane %v454_v0, 2 }
   0x3   :  { %v27_v7 = vrot.slane %v22_v5, 1  ;;  %v55_v9 = vrot.slane %v290_v1, 2  ;;  %v33_v10 = vrot.slane %v462_v2, 2  ;;  %v73_v11 = vld [vmem:[%s563_s1 + $0x58] sm:$0xff]  ;;  %v34_v13 = vrot.slane %v22_v5, 2  ;;  %v72_v15 = vld [vmem:[%s563_s1 + $0x50] sm:$0xff] }
   0x4   :  { %v50_v12 = vsel %vm25_vm0, %v48_v3, %v49_v4  ;;  %327 = vmatprep.subr.mxu0 %v73_v11  ;;  %v174_v14 = vld [vmem:[%s564_s2 + $0x58] sm:$0xff]  ;;  %v173_v17 = vld [vmem:[%s564_s2 + $0x50] sm:$0xff]  ;;  %v71_v20 = vld [vmem:[%s563_s1 + $0x48] sm:$0xff] }
   0x5   :  { %51 = vrot.lane.b32.xlu1 %v50_v12, %s416_s6  ;;  %v28_v16 = vsel %vm25_vm0, %v26_v6, %v27_v7  ;;  %354 = vmatprep.subr.mxu1 %v174_v14  ;;  %v56_v18 = vsel %vm32_vm1, %v54_v8, %v55_v9  ;;  %v35_v19 = vsel %vm32_vm1, %v33_v10, %v34_v13  ;;  %v172_v21 = vld [vmem:[%s564_s2 + $0x48] sm:$0xff]  ;;  %v70_v22 = vld [vmem:[%s563_s1 + $0x40] sm:$0xff]  ;;  %v69_v24 = vld [vmem:[%s563_s1 + $0x38] sm:$0xff] }
   0x6   :  { %29 = vrot.lane.b32.xlu0 %v28_v16, %s416_s6  ;;  %328 = vmatpush3.msra.mxu0 %v73_v11  ;;  %v171_v23 = vld [vmem:[%s564_s2 + $0x40] sm:$0xff] }
   0x7   :  { %355 = vmatpush3.msra.mxu1 %v174_v14  ;;  %329 = vmatprep.subr.mxu0 %v72_v15 }
   0x8   :  { %356 = vmatprep.subr.mxu1 %v173_v17  ;;  %330 = vmatpush3.msra.mxu0 %v72_v15 }
   0x9   :  { %57 = vrot.lane.b32.xlu1 %v56_v18, %s417_s13  ;;  %357 = vmatpush3.msra.mxu1 %v173_v17 }
   0xa   :  { %36 = vrot.lane.b32.xlu0 %v35_v19, %s417_s13  ;;  %331 = vmatprep.subr.mxu0 %v71_v20 }
   0xb   :  { %358 = vmatprep.subr.mxu1 %v172_v21  ;;  %332 = vmatpush3.msra.mxu0 %v71_v20 }
   0xc   :  { %10 = vsyncpa [#allocation3], 0  ;;  %359 = vmatpush3.msra.mxu1 %v172_v21  ;;  %333 = vmatprep.subr.mxu0 %v70_v22  ;;  %v170_v25 = vld [vmem:[%s564_s2 + $0x38] sm:$0xff]  ;;  %v68_v26 = vld [vmem:[%s563_s1 + $0x30] sm:$0xff]  ;;  %vm39_vm2 = vcmask 261120   ;;  %vm41_vm3 = vcmask 523264  }
   0xd   :  { %360 = vmatprep.subr.mxu1 %v171_v23  ;;  %334 = vmatpush3.msra.mxu0 %v70_v22  ;;  %v169_v27 = vld [vmem:[%s564_s2 + $0x30] sm:$0xff]  ;;  %v67_v28 = vld [vmem:[%s563_s1 + $0x28] sm:$0xff]  ;;  %v66_v30 = vld [vmem:[%s563_s1 + $0x20] sm:$0xff]  ;;  %vm81_vm4 = vcmask 785408  }
   0xe   :  { %361 = vmatpush3.msra.mxu1 %v171_v23  ;;  %335 = vmatprep.subr.mxu0 %v69_v24  ;;  %v168_v29 = vld [vmem:[%s564_s2 + $0x28] sm:$0xff]  ;;  %v167_v31 = vld [vmem:[%s564_s2 + $0x20] sm:$0xff]  ;;  %v65_v32 = vld [vmem:[%s563_s1 + $0x18] sm:$0xff] }
   0xf   :  { %362 = vmatprep.subr.mxu1 %v170_v25  ;;  %336 = vmatpush3.msra.mxu0 %v69_v24  ;;  %v166_v33 = vld [vmem:[%s564_s2 + $0x18] sm:$0xff]  ;;  %v64_v34 = vld [vmem:[%s563_s1 + $0x10] sm:$0xff]  ;;  %v63_v36 = vld [vmem:[%s563_s1 + $0x8] sm:$0xff] }
  0x10   :  { %363 = vmatpush3.msra.mxu1 %v170_v25  ;;  %337 = vmatprep.subr.mxu0 %v68_v26  ;;  %v165_v35 = vld [vmem:[%s564_s2 + $0x10] sm:$0xff]  ;;  %v164_v37 = vld [vmem:[%s564_s2 + $0x8] sm:$0xff]  ;;  %v62_v38 = vld [vmem:[%s563_s1] sm:$0xff] }
  0x11   :  { %364 = vmatprep.subr.mxu1 %v169_v27  ;;  %338 = vmatpush3.msra.mxu0 %v68_v26  ;;  %v163_v39 = vld [vmem:[%s564_s2] sm:$0xff] }
  0x12   :  { %365 = vmatpush3.msra.mxu1 %v169_v27  ;;  %339 = vmatprep.subr.mxu0 %v67_v28  ;;  %v294_v48 = vld [vmem:[%s566_s4] ss:$0 sm:$0xff]  ;;  %s418_s4 = smov [#allocation2]  }
  0x13   :  { %366 = vmatprep.subr.mxu1 %v168_v29  ;;  %340 = vmatpush3.msra.mxu0 %v67_v28  ;;  %v291_v60 = vld [vmem:[%s565_s3] ss:$0 sm:$0xff]  ;;  %s278_s26 = sshll.u32 %s418_s4, 4  ;;  %s279_s26 = int_to_ptr.vmem [resolvable:$true] %s278_s26 }
  0x14   :  { %367 = vmatpush3.msra.mxu1 %v168_v29  ;;  %341 = vmatprep.subr.mxu0 %v66_v30  ;;  %s394_s27 = scalar_lea.vmem %s279_s26, 256  ;;  %p399_p1 = scmp.lt.s32.totalorder %s279_s26, %s279_s26 }
  0x15   :  { %368 = vmatprep.subr.mxu1 %v167_v31  ;;  %342 = vmatpush3.msra.mxu0 %v66_v30  ;;  %p395_p0 = scmp.ne.s32.totalorder %s279_s26, %s394_s27  ;;  %p400_p2 = scmp.lt.s32.totalorder %s394_s27, %s394_s27 }
  0x16   :  { %369 = vmatpush3.msra.mxu1 %v167_v31  ;;  %343 = vmatprep.subr.mxu0 %v65_v32 }
  0x17   :  { %370 = vmatprep.subr.mxu1 %v166_v33  ;;  %344 = vmatpush3.msra.mxu0 %v65_v32  ;;  %p401_p3 = por %p400_p2, %p399_p1 }
  0x18   :  { %371 = vmatpush3.msra.mxu1 %v166_v33  ;;  %345 = vmatprep.subr.mxu0 %v64_v34 }
  0x19   :  { %372 = vmatprep.subr.mxu1 %v165_v35  ;;  %346 = vmatpush3.msra.mxu0 %v64_v34  ;;  %p402_p4 = pnand %p401_p3, %p395_p0 }
  0x1a   :  { %373 = vmatpush3.msra.mxu1 %v165_v35  ;;  %347 = vmatprep.subr.mxu0 %v63_v36 }
  0x1b   :  { %374 = vmatprep.subr.mxu1 %v164_v37  ;;  %348 = vmatpush3.msra.mxu0 %v63_v36 }
  0x1c   :  { %375 = vmatpush3.msra.mxu1 %v164_v37  ;;  %349 = vmatprep.subr.mxu0 %v62_v38 }
  0x1d   :  { %376 = vmatprep.subr.mxu1 %v163_v39  ;;  %350 = vmatpush3.msra.mxu0 %v62_v38 }
  0x1e   :  { %377 = vmatpush3.msra.mxu1 %v163_v39 }
  0x77   :  { %v52_v40 = vpop.permute.xlu1 %51 }
  0x78   :  { %v30_v41 = vpop.permute.xlu0 %29  ;;  %v60_v42 = vsel %vm39_vm2, %v454_v0, %v52_v40 }
  0x79   :  { %v40_v44 = vsel %vm39_vm2, %v462_v2, %v30_v41 }
  0x7b   :  { %v58_v43 = vpop.permute.xlu1 %57 }
  0x7c   :  { %v61_v45 = vsel %vm41_vm3, %v60_v42, %v58_v43  ;;  %v37_v46 = vpop.permute.xlu0 %36 }
  0x7d   :  { %v42_v47 = vsel %vm41_vm3, %v40_v44, %v37_v46 }
  0x7e   :  { %351 = vmatprep.mubr.msk.f32.mxu0 %vm81_vm4, %v42_v47  ;;  %378 = vmatprep.mubr.msk.f32.mxu1 %vm81_vm4, %v42_v47 }
  0x7f   :  { %352 = vmatmul.mubr.msk.f32.vlgmr.msra.gmra.mxu0 %vm81_vm4, %v61_v45  ;;  %379 = vmatmul.mubr.msk.f32.vlgmr.msra.gmra.mxu1 %vm81_vm4, %v61_v45 }
 0x13f   :  { %v380_v49 = vpop.f32.mrf.mxu1  ;;  %v353_v59 = vpop.f32.mrf.mxu0 }
 0x140   :  { %v254_v50 = vadd.f32 %v380_v49, %v294_v48  ;;  %v160_v62 = vadd.f32 %v353_v59, %v291_v60 }
 0x141   :  { %v248_v51 = vpop.f32.mrf.mxu1  ;;  %v154_v61 = vpop.f32.mrf.mxu0 }
 0x142   :  { %v298_v52 = vmul.f32 -1.442695, %v254_v50  ;;  %v249_v53 = vadd.f32 %v294_v48, %v248_v51  ;;  %v155_v0 = vadd.f32 %v291_v60, %v154_v61 }
 0x144   :  { %386 = vpow2.f32 %v298_v52  ;;  %v297_v54 = vmul.f32 -1.442695, %v249_v53 }
 0x146   :  { %388 = vpow2.f32 %v297_v54 }
 0x151   :  { %v387_v55 = vpop.eup %386 }
 0x152   :  { %v264_v56 = vadd.f32 1.0, %v387_v55 }
 0x153   :  { %v389_v57 = vpop.eup %388 }
 0x154   :  { %390 = vrcp.f32 %v264_v56  ;;  %v263_v58 = vadd.f32 1.0, %v389_v57 }
 0x156   :  { %392 = vrcp.f32 %v263_v58 }
 0x161   :  { %v391_v63 = vpop.eup %390 }
 0x162   :  { %v270_v1 = vmul.f32 %v391_v63, %v160_v62 }
 0x163   :  { %v393_v2 = vpop.eup %392 }
 0x164   :  { %v269_v3 = vmul.f32 %v393_v2, %v155_v0  ;;  %272 = vst.msk [vmem:[#allocation2 + $0x8] sm:$0xff] %vm39_vm2, %v270_v1 }
 0x166   :  { %271 = vst.msk [vmem:[#allocation2] sm:$0xff] %vm39_vm2, %v269_v3 }
 0x167   :  { %405 = shalt.err (!%p402_p4)
}
 0x168   :  { %s419_s3 = smov 128   ;;  %s420_s28 = smov 8  }
 0x169   :  { %284 = dma.vmem_to_hbm [thread:$0]  %s279_s26, 256, %s567_s5, [#allocation3], %s419_s3, %s419_s3, %s420_s28  }
 0x16a   :  { %414 = dma.done.wait [#allocation3], 256  }
 0x16b   :  { %415 = vsyncadd [#allocation3], 4294967040 }
 0x16c   :  { %288 = vsyncpa [#allocation3], 1 }

</bundles_post_ra>
